<compile_context>
chip_gen: v7x
topology: tpu7x:2x2x1
jax: 0.10.0
libtpu: 0.0.40
codegen_flags: <defaults>
</compile_context>

<pallas_src>
import functools

import jax
import jax.numpy as jnp
from jax.experimental import pallas as pl
from jax.experimental.pallas import tpu as pltpu

_LANE = 128
_SUBLANE = 8                      # f32 sublane count (accumulator layout)
_BLOCK_BYTES = 2 * 1024 * 1024    # per-block HBM->VMEM budget, in input bytes
_CHUNK_ROWS = 512                 # rows per in-kernel cast+accumulate chunk
_NUM_SPLITS = 2                   # leading "parallel" axis (v7x has 2 TCs)


def _sublane_quantum(dtype) -> int:
    """Minimum row-count tiling for the given element width."""
    itemsize = jnp.dtype(dtype).itemsize
    if itemsize >= 4:
        return 8
    if itemsize == 2:
        return 16
    return 32


def _sum_kernel(x_ref, o_ref, acc_ref, *, tile_m, last_rows, chunk_m, scale):
    """Stream (tile_m, 128) row blocks; accumulate into an (8, 128) f32 scratch.

    Grid is (num_core_splits, steps_per_core).  `x_ref` is this core's
    (tile_m, 128) block; `o_ref` is this core's (1, 1) partial output.
    `last_rows` is the (static) number of valid rows in the final block per
    core; it equals `tile_m` when every block is full.
    """
    j = pl.program_id(1)
    nsteps = pl.num_programs(1)

    @pl.when(j == 0)
    def _init():
        acc_ref[...] = jnp.zeros_like(acc_ref)

    def _accumulate(nrows):
        # `nrows` is static and a multiple of the sublane quantum: the chunk
        # loop fully unrolls with static slice offsets, so the steady state is
        # pure load + cast + vreg adds (no iota / select), and the f32 cast
        # temp stays at <= chunk_m rows (256 KiB) for any input dtype.
        partial = jnp.zeros((_SUBLANE, _LANE), jnp.float32)
        off = 0
        while off < nrows:
            size = min(chunk_m, nrows - off)
            xc = x_ref[off:off + size, :].astype(jnp.float32)
            partial = partial + xc.reshape(size // _SUBLANE, _SUBLANE,
                                           _LANE).sum(axis=0)
            off += size
        acc_ref[...] += partial

    if last_rows == tile_m:
        _accumulate(tile_m)                       # every block is full
    else:
        @pl.when(j < nsteps - 1)
        def _full():
            _accumulate(tile_m)

        @pl.when(j == nsteps - 1)
        def _partial():
            _accumulate(last_rows)                # only the valid prefix rows

    @pl.when(j == nsteps - 1)
    def _finalize():
        # Single cross-lane/sublane reduction per core; fold the mean's 1/N.
        o_ref[...] = (jnp.sum(acc_ref[...]) * scale).reshape(1, 1)


@functools.partial(jax.jit, static_argnames=("apply_mean", "block_rows"))
def _pallas_reduce(loss: jax.Array, apply_mean: bool = False,
                   block_rows=None) -> jax.Array:
    """f32 sum (or mean) of `loss` via a streaming Pallas reduction kernel."""
    flat = loss.reshape(-1)
    n = flat.shape[0]
    if n == 0:
        return jnp.float32(jnp.nan) if apply_mean else jnp.float32(0.0)

    scale = (1.0 / n) if apply_mean else 1.0
    itemsize = jnp.dtype(loss.dtype).itemsize
    q = _sublane_quantum(loss.dtype)

    # Split the stream across 2 TensorCores when there is enough aligned data;
    # harmless (one extra grid step) on single-core chips.
    nc = _NUM_SPLITS if n >= _NUM_SPLITS * q * _LANE else 1
    quantum = nc * q * _LANE

    # No jnp.pad: kernel handles the aligned prefix; the < quantum tail is a
    # tiny wrapper-side reduce.  For aligned sizes the prefix slice is free.
    bulk = (n // quantum) * quantum
    tail = jnp.float32(0.0)
    if bulk < n:
        tail = jnp.sum(flat[bulk:].astype(jnp.float32)) * scale
    if bulk == 0:
        return tail

    rows = bulk // _LANE                  # multiple of nc * q
    rows_pc = rows // nc                  # rows per core, multiple of q
    head = flat[:bulk].reshape(nc, rows_pc, _LANE)   # layout-preserving

    if block_rows is None:
        block_rows = max(q, _BLOCK_BYTES // (_LANE * itemsize))
    block_rows = max(q, (block_rows // q) * q)
    tile_m = min(block_rows, rows_pc)
    spc = pl.cdiv(rows_pc, tile_m)                       # steps per core
    last_rows = rows_pc - (spc - 1) * tile_m             # valid rows, last blk
    chunk_m = min(_CHUNK_ROWS, tile_m)

    kernel = functools.partial(_sum_kernel, tile_m=tile_m, last_rows=last_rows,
                               chunk_m=chunk_m, scale=scale)

    partials = pl.pallas_call(
        kernel,
        out_shape=jax.ShapeDtypeStruct((nc, 1, 1), jnp.float32),
        grid_spec=pltpu.PrefetchScalarGridSpec(
            num_scalar_prefetch=0,
            grid=(nc, spc),
            in_specs=[pl.BlockSpec((None, tile_m, _LANE),
                                   lambda c, j: (c, j, 0))],
            out_specs=pl.BlockSpec((None, 1, 1), lambda c, j: (c, 0, 0)),
            scratch_shapes=[pltpu.VMEM((_SUBLANE, _LANE), jnp.float32)],
        ),
        compiler_params=pltpu.CompilerParams(
            dimension_semantics=("parallel", "arbitrary")),
    )(head)

    return partials.sum() + tail


class Loss:
    """JAX/Pallas mirror of the PyTorch `Loss` base class."""

    _REDUCTIONS = ("mean", "sum", "none")

    def __init__(self, reduction: str = "mean") -> None:
        assert reduction in self._REDUCTIONS, (
            "Unexpected reduction: {}".format(reduction))
        self.reduction = reduction

    def _reduce(self, loss: jax.Array) -> jax.Array:
        if self.reduction == "none":
            # torch path is `lambda x: x` — true identity, no kernel / copy.
            return loss
        total = _pallas_reduce(loss, apply_mean=(self.reduction == "mean"))
        # torch.sum/mean return the input dtype; bf16 callers see bf16
        # rounding of the f32-accumulated result.
        return total.astype(loss.dtype)

    def forward(self, pred: jax.Array, target: jax.Array):
        # TODO(synk): `forward` is abstract in the reference module (raises
        # NotImplementedError); subclasses define the per-element loss.
        raise NotImplementedError()

    def __call__(self, pred, target):
        return self.forward(pred, target)


if __name__ == "__main__":
    key = jax.random.PRNGKey(0)
    kp, kt = jax.random.split(key)
    ok = True

    # --- Primary: NCHW f32 per-element loss map (lane-aligned) -------------
    pred = jax.random.normal(kp, (2, 4, 16, 16), dtype=jnp.float32)
    target = jax.random.normal(kt, (2, 4, 16, 16), dtype=jnp.float32)
    loss_map = (pred - target) ** 2  # stand-in per-element loss (forward abstract)

    for reduction in ("mean", "sum", "none"):
        mod = Loss(reduction=reduction)
        out = jax.block_until_ready(mod._reduce(loss_map))
        if reduction == "mean":
            ref = jnp.mean(loss_map)
        elif reduction == "sum":
            ref = jnp.sum(loss_map)
        else:
            ref = loss_map
        ok = ok and bool(jnp.allclose(out, ref, rtol=1e-5, atol=1e-5))

    # --- Multi-block + ragged last block + unaligned tail, forced small
    #     blocks: exercises the 2-way split and the partial-final-block path.
    loss_odd = jax.random.normal(jax.random.PRNGKey(1), (41, 128),
                                 dtype=jnp.float32) ** 2
    out_sum = jax.block_until_ready(
        _pallas_reduce(loss_odd, apply_mean=False, block_rows=16))
    ok = ok and bool(jnp.allclose(out_sum, jnp.sum(loss_odd),
                                  rtol=1e-5, atol=1e-5))
    out_mean = jax.block_until_ready(
        _pallas_reduce(loss_odd, apply_mean=True, block_rows=16))
    ok = ok and bool(jnp.allclose(out_mean, jnp.mean(loss_odd),
                                  rtol=1e-5, atol=1e-5))

    # --- bf16: native-dtype streaming, in-kernel f32 accumulation, tail ----
    loss_bf16 = (jax.random.normal(jax.random.PRNGKey(2), (4, 33, 40),
                                   dtype=jnp.float32) ** 2).astype(jnp.bfloat16)
    out_bf16 = jax.block_until_ready(Loss("sum")._reduce(loss_bf16))
    ref_bf16 = jnp.sum(loss_bf16.astype(jnp.float32))
    ok = ok and bool(jnp.allclose(jnp.float32(out_bf16), ref_bf16,
                                  rtol=2e-2, atol=1e-2))

    # Abstract forward must raise, as in the reference implementation.
    try:
        Loss()(pred, target)
        ok = False
    except NotImplementedError:
        pass

    print("KERNEL_OK" if ok else "MISMATCH")
</pallas_src>

<mosaic_0001>
module attributes {stable_mosaic.version = 11 : i64} {
  func.func @_sum_kernel(%arg0: i32, %arg1: i32, %arg2: memref<1x8x128xf32, #tpu.memory_space<vmem>>, %arg3: memref<1x1x1xf32, #tpu.memory_space<vmem>>, %arg4: memref<8x128xf32, #tpu.memory_space<vmem>>) attributes {dimension_semantics = [#tpu.dimension_semantics<parallel>, #tpu.dimension_semantics<arbitrary>], iteration_bounds = array<i64: 2, 1>, scalar_prefetch = 0 : i64, scratch_operands = 1 : i64, tpu.core_type = #tpu.core_type<tc>, window_params = [{transform_indices = @transform_0, window_bounds = array<i64: 1, 8, 128>}, {transform_indices = @transform_1, window_bounds = array<i64: 1, 1, 1>}]} {
    %c0_i32 = arith.constant 0 : i32
    %0 = arith.cmpi eq, %arg1, %c0_i32 : i32
    %1 = arith.extui %0 : i1 to i32
    %c0_i32_0 = arith.constant 0 : i32
    %2 = arith.cmpi ne, %1, %c0_i32_0 : i32
    scf.if %2 {
      %cst_10 = arith.constant 0.000000e+00 : f32
      %15 = vector.broadcast %cst_10 : f32 to vector<8x128xf32>
      %c0_11 = arith.constant 0 : index
      %c0_12 = arith.constant 0 : index
      %16 = vector.load %arg4[%c0_11, %c0_12] : memref<8x128xf32, #tpu.memory_space<vmem>>, vector<8x128xf32>
      tpu.vector_store %arg4[%c0_11, %c0_12], %15 {strides = array<i32>} : memref<8x128xf32, #tpu.memory_space<vmem>>, vector<8x128xf32>,
    } else {
    }
    %cst = arith.constant 0.000000e+00 : f32
    %3 = vector.broadcast %cst : f32 to vector<8x128xf32>
    %c0 = arith.constant 0 : index
    %c0_1 = arith.constant 0 : index
    %c0_2 = arith.constant 0 : index
    %4 = vector.load %arg2[%c0, %c0_1, %c0_2] : memref<1x8x128xf32, #tpu.memory_space<vmem>>, vector<1x8x128xf32>
    %5 = vector.shape_cast %4 : vector<1x8x128xf32> to vector<8x128xf32>
    %6 = vector.shape_cast %5 : vector<8x128xf32> to vector<1x8x128xf32>
    %cst_3 = arith.constant dense<0.000000e+00> : vector<8x128xf32>
    %7 = vector.multi_reduction <add>, %6, %cst_3 [0] : vector<1x8x128xf32> to vector<8x128xf32>
    %8 = arith.addf %3, %7 : vector<8x128xf32>
    %c0_4 = arith.constant 0 : index
    %c0_5 = arith.constant 0 : index
    %9 = vector.load %arg4[%c0_4, %c0_5] : memref<8x128xf32, #tpu.memory_space<vmem>>, vector<8x128xf32>
    %10 = arith.addf %9, %8 : vector<8x128xf32>
    %c0_6 = arith.constant 0 : index
    %c0_7 = arith.constant 0 : index
    %11 = vector.load %arg4[%c0_6, %c0_7] : memref<8x128xf32, #tpu.memory_space<vmem>>, vector<8x128xf32>
    tpu.vector_store %arg4[%c0_6, %c0_7], %10 {strides = array<i32>} : memref<8x128xf32, #tpu.memory_space<vmem>>, vector<8x128xf32>,
    %c0_i32_8 = arith.constant 0 : i32
    %12 = arith.cmpi eq, %arg1, %c0_i32_8 : i32
    %13 = arith.extui %12 : i1 to i32
    %c0_i32_9 = arith.constant 0 : i32
    %14 = arith.cmpi ne, %13, %c0_i32_9 : i32
    scf.if %14 {
      %c0_10 = arith.constant 0 : index
      %c0_11 = arith.constant 0 : index
      %15 = vector.load %arg4[%c0_10, %c0_11] : memref<8x128xf32, #tpu.memory_space<vmem>>, vector<8x128xf32>
      %16 = vector.shape_cast %15 : vector<8x128xf32> to vector<1x8x128xf32>
      %cst_12 = arith.constant dense<0.000000e+00> : vector<1xf32>
      %17 = vector.multi_reduction <add>, %16, %cst_12 [1, 2] : vector<1x8x128xf32> to vector<1xf32>
      %18 = vector.shape_cast %17 : vector<1xf32> to vector<1x1x1xf32>
      %19 = vector.extract %18[0, 0, 0] : f32 from vector<1x1x1xf32>
      %cst_13 = arith.constant 4.8828125E-4 : f32
      %20 = arith.mulf %19, %cst_13 : f32
      %21 = vector.broadcast %20 : f32 to vector<1x1xf32>
      %c0_14 = arith.constant 0 : index
      %c0_15 = arith.constant 0 : index
      %c0_16 = arith.constant 0 : index
      %22 = vector.load %arg3[%c0_14, %c0_15, %c0_16] : memref<1x1x1xf32, #tpu.memory_space<vmem>>, vector<1x1x1xf32>
      %23 = vector.shape_cast %22 : vector<1x1x1xf32> to vector<1x1xf32>
      %24 = vector.shape_cast %21 : vector<1x1xf32> to vector<1x1x1xf32>
      tpu.vector_store %arg3[%c0_14, %c0_15, %c0_16], %24 {strides = array<i32>} : memref<1x1x1xf32, #tpu.memory_space<vmem>>, vector<1x1x1xf32>,
    } else {
    }
    return
  }
  func.func @transform_0(%arg0: i32, %arg1: i32) -> (i32, i32, i32) {
    %c0_i32 = arith.constant 0 : i32
    %c0_i32_0 = arith.constant 0 : i32
    return %arg0, %arg1, %c0_i32 : i32, i32, i32
  }
  func.func @transform_1(%arg0: i32, %arg1: i32) -> (i32, i32, i32) {
    %c0_i32 = arith.constant 0 : i32
    %c0_i32_0 = arith.constant 0 : i32
    %c0_i32_1 = arith.constant 0 : i32
    return %arg0, %c0_i32, %c0_i32_0 : i32, i32, i32
  }
}

</mosaic_0001>

<bundles_post_ra>
// kernel: _pallas_reduce.1
= control target key start
LH: loop header
LB: loop body
LE: loop exit
PB: predicated region body
PF: predicated region fallthrough
CT: control target
= control target key end

     0   :  { %s287_s6 = smov 0   ;;  %s289_s7 = smov 0   ;;  %s317_s0 = inlined_call_operand.vmem [shape: f32[2,8,128], index: 0, kind: input, shape index: {}]   ;;  %s318_s1 = inlined_call_operand.vmem [shape: f32[2,1,1], index: 1, kind: output, shape index: {}]  }
   0x1   :  { %s291_s8 = smov 0  }
   0x2 LB: > { %s23_s9 = sadd.s32 1, %s271_s7  ;;  %p223_p0 = scmp.ge.s32.totalorder %s275_s8, 1  ;;  %s275_s8 = sphi %s291_s8, %s11_s8   ;;  %s271_s7 = sphi %s289_s7, %s320_s7   ;;  %s267_s6 = sphi %s287_s6, %s319_s6  }
   0x3   : > { %p25_p1 = scmp.ge.s32.totalorder %s23_s9, 2  ;;  %p103_p2 = scmp.lt.s32.totalorder %s275_s8, 3 }
   0x5   : > { %s322_s9 = smov (%p25_p1, %s23_s9), 0  ;;  %p104_p3 = pnand %p223_p0, %p103_p2 }
   0x6   : > { %p123_p4 = scmp.lt.s32.totalorder (!%p104_p3), %s267_s6, 1  ;;  %vm159_vm0 = vcmask (!%p104_p3), 0  }
   0x7   : > { %107 = sbr.rel (%p104_p3) target bundleno = 226 (0xe2), region = 24 }
   0xe   : > { %s324_s6 = smov (!%p123_p4, %s267_s6), 1 }
   0xf   : > { %s224_s10 = sshll.u32 %s324_s6, 3  ;;  %s132_s17 = scalar_lea.vmem %s318_s1, %s324_s6 }
  0x10   : > { %s129_s13 = scalar_lea.vmem %s317_s0, %s224_s10 }
  0x11   : > { %v138_v0 = vld [vmem:[%s129_s13] sm:$0xff] }
  0x12   : > { %148 = vadd.xlane.f32.xlu0 %v138_v0 }
  0x9f   : > { %v149_v1 = vpop.xlane.xlu0 %148 }
  0xa0   : > { %v150_v2 = vrot.slane %v149_v1, 4 }
  0xa2   : > { %v151_v3 = vadd.f32 %v150_v2, %v149_v1 }
  0xa4   : > { %v152_v4 = vrot.slane %v151_v3, 2 }
  0xa6   : > { %v153_v5 = vadd.f32 %v152_v4, %v151_v3 }
  0xa8   : > { %v154_v6 = vrot.slane %v153_v5, 1 }
  0xaa   : > { %v155_v7 = vadd.f32 %v154_v6, %v153_v5 }
  0xac   : > { %227 = vpush %v155_v7 }
  0xdd   : > { %s228_s14 = spop %227 }
  0xde   : > { %s157_s18 = smul.f32 0.00048828125, %s228_s14 }
  0xe0   : > { %v158_v8 = vstv %s157_s18 }
  0xe1   : > { %160 = vst.msk [vmem:[%s132_s17] sm:$0x1] %vm159_vm0, %v158_v8 }
  0xe2 PF: > { %s11_s8 = sadd.s32 1, %s275_s8   ;;  %s319_s6 = smov %s271_s7 }
  0xe3   : > { %p8_p5 = scmp.ge.s32.totalorder %s11_s8, 4   ;;  %s320_s7 = smov %s322_s9 }
  0xe5   :  { %10 = sbr.rel (!%p8_p5) target bundleno = 2 (0x2), region = 62 }

</bundles_post_ra>
